<compile_context>
chip_gen: v7x
topology: tpu7x:2x2x1
jax: 0.10.0
libtpu: 0.0.40
codegen_flags: <defaults>
</compile_context>

<pallas_src>
import math
from functools import lru_cache, partial

import jax
import jax.numpy as jnp
from jax.experimental import pallas as pl
from jax.experimental.pallas import tpu as pltpu

# ---------------- config (small shapes) ----------------
BATCH = 2
BPAD = 8                       # pad batch/M to the f32 sublane tile (8,128)
IN_CH = 3
IMG = 32                       # 32x32 -> 8x8 patches of dim 3*4*4 = 48
PATCH = 4
K_STEM = IN_CH * PATCH * PATCH # 48
FEAT_DIM = 768                 # backbone feature dim (fixed by the module)
GENDER_CLASSES = 2
GENDER_PAD = 128               # lane-dense padded gender logits
EMBEDDING_DIM = 512
NUM_IDENTITIES = 128
ARC_MARGIN = 0.5
ARC_SCALE = 64.0

BN_EPS = 1e-5                  # nn.BatchNorm1d default eps
NORM_EPS = 1e-12               # F.normalize default eps

COS_M = math.cos(ARC_MARGIN)
SIN_M = math.sin(ARC_MARGIN)
TH = math.cos(math.pi - ARC_MARGIN)
MM = math.sin(math.pi - ARC_MARGIN) * ARC_MARGIN

_VMEM = pl.BlockSpec(memory_space=pltpu.MemorySpace.VMEM)


# ---------------- task-specialized fused kernel factory ----------------
@lru_cache(maxsize=None)
def _make_fused_call(want_gender: bool, want_emb: bool, want_arc: bool):
    """Build a pallas_call that only streams the weights this task needs."""

    def kernel(*all_refs):
        refs = list(all_refs)
        # ---- inputs (order must match the wrapper's arg list) ----
        pm_ref = refs.pop(0); stem_w_ref = refs.pop(0); stem_b_ref = refs.pop(0)
        if want_gender:
            gw1 = refs.pop(0); gb1 = refs.pop(0)
            gw2 = refs.pop(0); gb2 = refs.pop(0)
            gw3 = refs.pop(0); gb3 = refs.pop(0)
        if want_emb:
            vw1 = refs.pop(0); vb1 = refs.pop(0)
            vw2 = refs.pop(0); vb2 = refs.pop(0)
        if want_arc:
            arc_wt_ref = refs.pop(0); lbl_ref = refs.pop(0)
        # ---- outputs ----
        feat_ref = refs.pop(0)
        if want_gender:
            gender_ref = refs.pop(0)
        if want_emb:
            emb_ref = refs.pop(0)
        if want_arc:
            arc_ref = refs.pop(0)

        # Backbone: 4x4/s4 patchify conv with the global average pool folded
        # into the contraction (pm = mean over patches of the im2col rows).
        feat = jnp.dot(pm_ref[...], stem_w_ref[...],
                       preferred_element_type=jnp.float32) + stem_b_ref[...]
        feat_ref[...] = feat
        feat_bf = feat.astype(jnp.bfloat16)

        if want_gender:
            # Linear+BN+ReLU x2 + Linear (BN folded, Dropout=identity, eval mode)
            g = jnp.dot(feat_bf, gw1[...],
                        preferred_element_type=jnp.float32) + gb1[...]
            g = jnp.maximum(g, 0.0)
            g = jnp.dot(g.astype(jnp.bfloat16), gw2[...],
                        preferred_element_type=jnp.float32) + gb2[...]
            g = jnp.maximum(g, 0.0)
            gender_ref[...] = jnp.dot(g.astype(jnp.bfloat16), gw3[...],
                                      preferred_element_type=jnp.float32) + gb3[...]

        if want_emb:
            # Verification head: Linear+BN+ReLU, Linear+BN, then L2 normalize.
            e = jnp.dot(feat_bf, vw1[...],
                        preferred_element_type=jnp.float32) + vb1[...]
            e = jnp.maximum(e, 0.0)
            e = jnp.dot(e.astype(jnp.bfloat16), vw2[...],
                        preferred_element_type=jnp.float32) + vb2[...]
            # x * rsqrt(max(sumsq, eps^2)) == x / max(||x||, eps)  (F.normalize)
            inv_n = jax.lax.rsqrt(jnp.maximum(
                jnp.sum(e * e, axis=1, keepdims=True), NORM_EPS * NORM_EPS))
            emb = e * inv_n
            emb_ref[...] = emb

        if want_arc:
            # ArcFace margin logits (arc_wt columns pre-normalized; emb unit-norm).
            cosine = jnp.dot(emb.astype(jnp.bfloat16), arc_wt_ref[...],
                             preferred_element_type=jnp.float32)
            sine = jnp.sqrt(jnp.maximum(1.0 - cosine * cosine, 0.0))  # no NaN at |cos|~1
            phi = cosine * COS_M - sine * SIN_M
            phi = jnp.where(cosine > TH, phi, cosine - MM)
            lbl = lbl_ref[...]                                        # (BPAD, 1) int32
            ids = jax.lax.broadcasted_iota(jnp.int32, (BPAD, NUM_IDENTITIES), 1)
            oh = (ids == lbl).astype(jnp.float32)                     # in-kernel one-hot
            arc_ref[...] = (oh * phi + (1.0 - oh) * cosine) * ARC_SCALE

    n_in = 3 + (6 if want_gender else 0) + (4 if want_emb else 0) + (2 if want_arc else 0)
    out_shapes = [jax.ShapeDtypeStruct((BPAD, FEAT_DIM), jnp.float32)]
    if want_gender:
        out_shapes.append(jax.ShapeDtypeStruct((BPAD, GENDER_PAD), jnp.float32))
    if want_emb:
        out_shapes.append(jax.ShapeDtypeStruct((BPAD, EMBEDDING_DIM), jnp.float32))
    if want_arc:
        out_shapes.append(jax.ShapeDtypeStruct((BPAD, NUM_IDENTITIES), jnp.float32))

    return pl.pallas_call(
        kernel,
        out_shape=tuple(out_shapes),
        in_specs=[_VMEM] * n_in,
        out_specs=tuple([_VMEM] * len(out_shapes)),
    )


# ---------------- jitted dispatcher (trace-time task specialization) --------
@partial(jax.jit, static_argnames=("want_gender", "want_ver", "want_arc"))
def _forward(x, labels, params, *, want_gender, want_ver, want_arc):
    need_emb = want_ver or want_arc
    B = x.shape[0]
    Hp, Wp = x.shape[2] // PATCH, x.shape[3] // PATCH
    # patch-mean in (c, kh, kw) order: mean over the Hp x Wp patch grid
    pm = x.reshape(B, IN_CH, Hp, PATCH, Wp, PATCH).mean(axis=(2, 4)).reshape(B, K_STEM)
    pm = jnp.zeros((BPAD, K_STEM), jnp.float32).at[:B].set(pm)   # pad M to (8,...)
    args = [pm.astype(jnp.bfloat16), params["stem_w_t"], params["stem_b"]]
    if want_gender:
        args += [params["g_w1"], params["g_b1"], params["g_w2"], params["g_b2"],
                 params["g_w3"], params["g_b3"]]
    if need_emb:
        args += [params["v_w1"], params["v_b1"], params["v_w2"], params["v_b2"]]
    if want_arc:
        lbl = jnp.zeros((BPAD, 1), jnp.int32).at[:B, 0].set(labels.astype(jnp.int32))
        args += [params["arc_wt"], lbl]

    outs = list(_make_fused_call(want_gender, need_emb, want_arc)(*args))
    res = {"feat": outs.pop(0)[:B]}
    if want_gender:
        res["gender"] = outs.pop(0)[:B, :GENDER_CLASSES]
    if need_emb:
        res["embedding"] = outs.pop(0)[:B]
    if want_arc:
        res["arc_logits"] = outs.pop(0)[:B]
    return res


# ---------------- parameter construction (deterministic, eval-mode BN folded) ----
def _fold_linear_bn(w, b, gamma, beta, mean, var):
    # y = BN(x @ w + b)  ->  x @ (w*s) + (b*s + (beta - mean*s)),  s = gamma/sqrt(var+eps)
    s = gamma / jnp.sqrt(var + BN_EPS)
    return w * s[None, :], (b * s + (beta - mean * s)).reshape(1, -1)


def build_params(key):
    ks = jax.random.split(key, 8)

    def lin(k, din, dout, scale=0.02):
        kw, kb = jax.random.split(k)
        return (jax.random.normal(kw, (din, dout), jnp.float32) * scale,
                jax.random.normal(kb, (dout,), jnp.float32) * scale)

    def bn(d):  # eval-mode stats: gamma=1, beta=0, running_mean=0, running_var=1
        return (jnp.ones((d,)), jnp.zeros((d,)), jnp.zeros((d,)), jnp.ones((d,)))

    p = {}
    # TODO(synk): the full pretrained timm ConvNeXt-tiny stage stack has no clean
    # in-script equivalent; a deterministic 4x4/s4 patchify conv to 768 channels
    # + global average pool stands in, preserving the [B, 768] feature interface.
    stem_w = jax.random.normal(ks[0], (FEAT_DIM, IN_CH, PATCH, PATCH), jnp.float32) * 0.05
    p["stem_w_t"] = stem_w.reshape(FEAT_DIM, K_STEM).T.astype(jnp.bfloat16)   # [48, 768]
    p["stem_b"] = (jax.random.normal(ks[1], (FEAT_DIM,), jnp.float32) * 0.05).reshape(1, -1)

    # gender head (all weights bf16, biases f32)
    w, b = lin(ks[2], FEAT_DIM, 512)
    w, bias = _fold_linear_bn(w, b, *bn(512))
    p["g_w1"], p["g_b1"] = w.astype(jnp.bfloat16), bias
    w, b = lin(ks[3], 512, 256)
    w, bias = _fold_linear_bn(w, b, *bn(256))
    p["g_w2"], p["g_b2"] = w.astype(jnp.bfloat16), bias
    w, b = lin(ks[4], 256, GENDER_CLASSES)
    p["g_w3"] = jnp.zeros((256, GENDER_PAD), jnp.float32).at[:, :GENDER_CLASSES].set(w) \
                   .astype(jnp.bfloat16)
    p["g_b3"] = jnp.zeros((1, GENDER_PAD), jnp.float32).at[:, :GENDER_CLASSES].set(b)

    # verification head (both big weights bf16)
    w, b = lin(ks[5], FEAT_DIM, 1024)
    w, bias = _fold_linear_bn(w, b, *bn(1024))
    p["v_w1"], p["v_b1"] = w.astype(jnp.bfloat16), bias
    w, b = lin(ks[6], 1024, EMBEDDING_DIM)
    w, bias = _fold_linear_bn(w, b, *bn(EMBEDDING_DIM))
    p["v_w2"], p["v_b2"] = w.astype(jnp.bfloat16), bias

    # arcface weight: pre-normalize rows, pre-transpose to [emb_dim, classes], bf16
    lim = math.sqrt(6.0 / (NUM_IDENTITIES + EMBEDDING_DIM))
    arc_w = jax.random.uniform(ks[7], (NUM_IDENTITIES, EMBEDDING_DIM),
                               jnp.float32, -lim, lim)
    arc_w = arc_w * jax.lax.rsqrt(jnp.maximum(
        jnp.sum(arc_w * arc_w, axis=1, keepdims=True), NORM_EPS * NORM_EPS))
    p["arc_wt"] = arc_w.T.astype(jnp.bfloat16)                                # [512, 128]
    return p


# ---------------- model-level wrappers ----------------
def convnext_backbone_forward(x, params):
    # ConvNeXtBackbone.forward: features -> AdaptiveAvgPool2d(1) -> Flatten
    # (streams only the stem weights)
    return _forward(x, None, params,
                    want_gender=False, want_ver=False, want_arc=False)["feat"]


def final_hybrid_forward(x, params, task="both"):
    res = _forward(x, None, params,
                   want_gender=task in ("gender", "both"),
                   want_ver=task in ("embedding", "both"),
                   want_arc=False)
    out = {}
    if "gender" in res:
        out["gender"] = res["gender"]
    if "embedding" in res:
        out["embedding"] = res["embedding"]
    return out


def arcface_forward(x, labels, params):
    res = _forward(x, labels, params,
                   want_gender=False, want_ver=True, want_arc=True)
    return res["arc_logits"], res["embedding"]


if __name__ == "__main__":
    key = jax.random.PRNGKey(0)
    kx, kl, kp = jax.random.split(key, 3)
    x = jax.random.normal(kx, (BATCH, IN_CH, IMG, IMG), jnp.float32)
    labels = jax.random.randint(kl, (BATCH,), 0, NUM_IDENTITIES)
    params = build_params(kp)

    feat = convnext_backbone_forward(x, params)
    outputs = final_hybrid_forward(x, params, task="both")
    logits, emb = arcface_forward(x, labels, params)

    jax.block_until_ready((feat, outputs["gender"], outputs["embedding"], logits, emb))
    assert feat.shape == (BATCH, FEAT_DIM)
    assert outputs["gender"].shape == (BATCH, GENDER_CLASSES)
    assert outputs["embedding"].shape == (BATCH, EMBEDDING_DIM)
    assert logits.shape == (BATCH, NUM_IDENTITIES)
    assert emb.shape == (BATCH, EMBEDDING_DIM)
    assert bool(jnp.all(jnp.isfinite(feat))) and bool(jnp.all(jnp.isfinite(logits)))
    print("KERNEL_OK")
</pallas_src>

<mosaic_0001>
module attributes {stable_mosaic.version = 11 : i64} {
  func.func @kernel(%arg0: memref<8x48xbf16, #tpu.memory_space<vmem>>, %arg1: memref<48x768xbf16, #tpu.memory_space<vmem>>, %arg2: memref<1x768xf32, #tpu.memory_space<vmem>>, %arg3: memref<8x768xf32, #tpu.memory_space<vmem>>) attributes {dimension_semantics = [], scalar_prefetch = 0 : i64, scratch_operands = 0 : i64, tpu.core_type = #tpu.core_type<tc>} {
    %c0 = arith.constant 0 : index
    %c0_0 = arith.constant 0 : index
    %0 = vector.load %arg0[%c0, %c0_0] : memref<8x48xbf16, #tpu.memory_space<vmem>>, vector<8x48xbf16>
    %c0_1 = arith.constant 0 : index
    %c0_2 = arith.constant 0 : index
    %1 = vector.load %arg1[%c0_1, %c0_2] : memref<48x768xbf16, #tpu.memory_space<vmem>>, vector<48x768xbf16>
    %cst = arith.constant dense<0.000000e+00> : vector<8x768xf32>
    %2 = tpu.matmul %0, %1, %cst {dimension_numbers = #tpu.dot_dimension_numbers<[1], [0], [0], [1], [0, 0, 1, 1], [], []>} : vector<8x48xbf16>, vector<48x768xbf16>, vector<8x768xf32> -> vector<8x768xf32>
    %c0_3 = arith.constant 0 : index
    %c0_4 = arith.constant 0 : index
    %3 = vector.load %arg2[%c0_3, %c0_4] : memref<1x768xf32, #tpu.memory_space<vmem>>, vector<1x768xf32>
    %4 = vector.broadcast %3 : vector<1x768xf32> to vector<8x768xf32>
    %5 = arith.addf %2, %4 : vector<8x768xf32>
    %c0_5 = arith.constant 0 : index
    %c0_6 = arith.constant 0 : index
    %6 = vector.load %arg3[%c0_5, %c0_6] : memref<8x768xf32, #tpu.memory_space<vmem>>, vector<8x768xf32>
    tpu.vector_store %arg3[%c0_5, %c0_6], %5 {strides = array<i32>} : memref<8x768xf32, #tpu.memory_space<vmem>>, vector<8x768xf32>,
    return
  }
}

</mosaic_0001>

<bundles_post_ra>
// kernel: _forward.1
= control target key start
LH: loop header
LB: loop body
LE: loop exit
PB: predicated region body
PF: predicated region fallthrough
CT: control target
= control target key end

     0   :  { %v342_v1 = vmov 0   ;;  %vm156_vm0 = vcmask 392192   ;;  %v36_v20 = vlaneseq  ;;  %s444_s1 = inlined_call_operand.vmem [shape: bf16[48,768], index: 1, kind: input, shape index: {}]   ;;  %s445_s0 = inlined_call_operand.vmem [shape: bf16[8,48], index: 0, kind: input, shape index: {}]   ;;  %s446_s2 = inlined_call_operand.vmem [shape: f32[1,768], index: 2, kind: input, shape index: {}]   ;;  %s447_s3 = inlined_call_operand.vmem [shape: f32[8,768], index: 3, kind: output, shape index: {}]  }
   0x1   :  { %v315_v0 = vld [vmem:[%s444_s1 + $0x4] ss:$24 sps:$4 sm:$0xff]   ;;  %192 = vmatprep.mubr.bf16.mxu0 %v342_v1  ;;  %233 = vmatprep.mubr.bf16.mxu1 %v342_v1  ;;  %v317_v2 = vld [vmem:[%s444_s1] ss:$24 sps:$4 sm:$0xff]   ;;  %v318_v3 = vld [vmem:[%s444_s1 + $0x34] ss:$24 sps:$4 sm:$0xff]  }
   0x2   :  { %160 = vmatprep.subr.bf16.mxu0 %v315_v0  ;;  %v320_v4 = vld [vmem:[%s444_s1 + $0x30] ss:$24 sps:$4 sm:$0xff]   ;;  %v321_v5 = vld [vmem:[%s444_s1 + $0x64] ss:$24 sps:$4 sm:$0xff]   ;;  %v323_v8 = vld [vmem:[%s444_s1 + $0x60] ss:$24 sps:$4 sm:$0xff]  }
   0x3   :  { %161 = vmatpush1.bf16.msra.mxu0 %v317_v2  ;;  %v324_v6 = vld [vmem:[%s444_s1 + $0xc] ss:$24 sps:$4 sm:$0xff]   ;;  %v326_v7 = vld [vmem:[%s444_s1 + $0x8] ss:$24 sps:$4 sm:$0xff]   ;;  %v330_v10 = vld [vmem:[%s444_s1 + $0x3c] ss:$24 sps:$4 sm:$0xff]  }
   0x4   :  { %162 = vmatprep.subr.bf16.mxu0 %v318_v3  ;;  %201 = vmatprep.subr.bf16.mxu1 %v324_v6  ;;  %v329_v9 = vld [vmem:[%s444_s1 + $0x14] ss:$24 sps:$4 sm:$0xff]   ;;  %v332_v11 = vld [vmem:[%s444_s1 + $0x38] ss:$24 sps:$4 sm:$0xff]   ;;  %v15_v12 = vld [vmem:[%s445_s0] sm:$0xf] }
   0x5   :  { %202 = vmatpush1.bf16.msra.mxu1 %v326_v7  ;;  %v327_v13 = vld [vmem:[%s444_s1 + $0x10] ss:$24 sps:$4 sm:$0xff]   ;;  %v336_v14 = vld [vmem:[%s444_s1 + $0x6c] ss:$24 sps:$4 sm:$0xff]   ;;  %v333_v17 = vld [vmem:[%s444_s1 + $0x40] ss:$24 sps:$4 sm:$0xff]  }
   0x6   :  { %203 = vmatprep.subr.bf16.mxu1 %v330_v10  ;;  %v338_v15 = vld [vmem:[%s444_s1 + $0x68] ss:$24 sps:$4 sm:$0xff]   ;;  %v335_v16 = vld [vmem:[%s444_s1 + $0x44] ss:$24 sps:$4 sm:$0xff]   ;;  %v341_v18 = vld [vmem:[%s444_s1 + $0x74] ss:$24 sps:$4 sm:$0xff]  }
   0x7   :  { %163 = vmatpush1.bf16.msra.mxu0 %v320_v4  ;;  %v339_v19 = vld [vmem:[%s444_s1 + $0x70] ss:$24 sps:$4 sm:$0xff]   ;;  %v37_v21 = vshrl.u32 %v36_v20, 7  ;;  %v34_v23 = vld [vmem:[%s446_s2] sm:$0x3f] }
   0x8   :  { %164 = vmatprep.subr.bf16.mxu0 %v321_v5 }
   0x9   :  { %204 = vmatpush1.bf16.msra.mxu1 %v332_v11  ;;  %v38_v22 = vsub.s32 0, %v37_v21  ;;  %v42_v24 = vsub.s32 1, %v37_v21  ;;  %v46_v26 = vsub.s32 2, %v37_v21  ;;  %v50_v28 = vsub.s32 3, %v37_v21 }
   0xa   :  { %205 = vmatprep.subr.bf16.mxu1 %v336_v14  ;;  %v54_v40 = vsub.s32 4, %v37_v21  ;;  %v58_v43 = vsub.s32 5, %v37_v21 }
   0xb   :  { %165 = vmatpush1.bf16.msra.mxu0 %v323_v8  ;;  %v39_v25 = vrot.slane %v34_v23, %v38_v22  ;;  %v43_v27 = vrot.slane %v34_v23, %v42_v24  ;;  %v47_v32 = vrot.slane %v34_v23, %v46_v26  ;;  %v51_v35 = vrot.slane %v34_v23, %v50_v28 }
   0xc   :  { %242 = vmatprep.subr.bf16.mxu0 %v329_v9  ;;  %v55_v45 = vrot.slane %v34_v23, %v54_v40  ;;  %v59_v46 = vrot.slane %v34_v23, %v58_v43 }
   0xd   :  { %206 = vmatpush1.bf16.msra.mxu1 %v338_v15 }
   0xe   :  { %311 = vmatmul.mubr.msk.bf16.vlgmr.msra.gmra.mrb[0].mxu0 %vm156_vm0, %v15_v12 }
   0xf   :  { %243 = vmatpush1.bf16.msra.mxu0 %v327_v13  ;;  %274 = vmatprep.mubr.bf16.mxu0 %v342_v1 }
  0x10   :  { %244 = vmatprep.subr.bf16.mxu0 %v335_v16  ;;  %312 = vmatmul.mubr.msk.bf16.vlgmr.msra.gmra.mrb[0].mxu1 %vm156_vm0, %v15_v12 }
  0x13   :  { %245 = vmatpush1.bf16.msra.mxu0 %v333_v17 }
  0x14   :  { %246 = vmatprep.subr.bf16.mxu0 %v341_v18 }
  0x17   :  { %247 = vmatpush1.bf16.msra.mxu0 %v339_v19 }
  0x1a   :  { %313 = vmatmul.mubr.msk.bf16.vlgmr.msra.gmra.mrb[4].mxu0 %vm156_vm0, %v15_v12 }
  0xe1   :  { %v194_v29 = vpop.f32.mrb[0].mxu0 }
  0xe2   :  { %v195_v30 = vadd.f32 %v194_v29, %v39_v25  ;;  %v196_v31 = vpop.f32.mrb[1].mxu0 }
  0xe3   :  { %v197_v33 = vadd.f32 %v196_v31, %v43_v27  ;;  %v198_v34 = vpop.f32.mrb[2].mxu0  ;;  %v235_v37 = vpop.f32.mrb[0].mxu1 }
  0xe4   :  { %283 = vst [vmem:[%s447_s3] sm:$0xff] %v195_v30  ;;  %v199_v36 = vpop.f32.mrb[3].mxu0  ;;  %v236_v38 = vadd.f32 %v235_v37, %v47_v32  ;;  %v237_v39 = vpop.f32.mrb[1].mxu1 }
  0xe5   :  { %284 = vst [vmem:[%s447_s3 + $0x8] sm:$0xff] %v197_v33  ;;  %v238_v41 = vadd.f32 %v237_v39, %v51_v35  ;;  %v239_v42 = vpop.f32.mrb[2].mxu1 }
  0xe6   :  { %285 = vst [vmem:[%s447_s3 + $0x10] sm:$0xff] %v236_v38  ;;  %v240_v44 = vpop.f32.mrb[3].mxu1 }
  0xe7   :  { %286 = vst [vmem:[%s447_s3 + $0x18] sm:$0xff] %v238_v41 }
  0xed   :  { %v276_v47 = vpop.f32.mrb[4].mxu0 }
  0xee   :  { %v277_v48 = vadd.f32 %v276_v47, %v55_v45  ;;  %v278_v49 = vpop.f32.mrb[5].mxu0 }
  0xef   :  { %v279_v50 = vadd.f32 %v278_v49, %v59_v46  ;;  %v280_v51 = vpop.f32.mrb[6].mxu0 }
  0xf0   :  { %287 = vst [vmem:[%s447_s3 + $0x20] sm:$0xff] %v277_v48  ;;  %v281_v52 = vpop.f32.mrb[7].mxu0 }
  0xf1   :  { %288 = vst [vmem:[%s447_s3 + $0x28] sm:$0xff] %v279_v50 }

</bundles_post_ra>
